<compile_context>
chip_gen: v5e
topology: v5e:2x2
jax: 0.10.0
libtpu: 0.0.40
codegen_flags: <defaults>
</compile_context>

<pallas_src>
import functools

import jax
import jax.numpy as jnp
from jax.experimental import pallas as pl
from jax.experimental.pallas import tpu as pltpu


def _pick_row_tile(B, max_logits_bytes=12 << 20):
    """Row tile tm: as large as possible (amortize per-step overhead) while the
    f32 (tm, B) logits + exp working set stays modest.  The column extent is
    always the full B (f2 is VMEM-resident), so only tm matters for intensity."""
    t = B
    for cand in (1024, 512, 256, 128, 64, 32, 16, 8):
        if B % cand == 0:
            t = cand
            break
    while t > 8 and (B % (t // 2) == 0) and 2 * t * B * 4 > max_logits_bytes:
        t //= 2
    return t


def _infonce_kernel(scale_ref, f1_ref, f2_ref,
                    row_lse_ref, col_sum_ref, col_max_ref, *, static_shift):
    # f1_ref: (tm, D) bf16 row tile (logit_scale already folded in).
    # f2_ref: (B, D) bf16, VMEM-resident across the whole grid (fetched once).
    logits = jax.lax.dot_general(
        f1_ref[...], f2_ref[...], (((1,), (1,)), ((), ())),
        preferred_element_type=jnp.float32)                              # (tm, B)

    if static_shift:
        # |logits| <= logit_scale (unit-norm features), so one static shift is
        # numerically safe and a single exp per element is shared by the row and
        # column sums (halves EUP work vs per-direction shifts).
        shift = scale_ref[0, 0]
        e = jnp.exp(logits - shift)                                      # (tm, B)
        row_lse = shift + jnp.log(jnp.sum(e, axis=-1, keepdims=True))    # (tm, 1)
        col_sum = jnp.sum(e, axis=0, keepdims=True)                      # (1, B)
        col_max = jnp.full(col_sum.shape, shift, dtype=jnp.float32)
    else:
        # Fallback for very large logit_scale: per-direction shifts.
        row_max = jnp.max(logits, axis=-1, keepdims=True)
        row_lse = row_max + jnp.log(
            jnp.sum(jnp.exp(logits - row_max), axis=-1, keepdims=True))
        col_max = jnp.max(logits, axis=0, keepdims=True)                 # (1, B)
        col_sum = jnp.sum(jnp.exp(logits - col_max), axis=0, keepdims=True)

    # Per-row LSE (tiny (tm, 1) store) + lane-dense per-block column partials.
    row_lse_ref[...] = row_lse
    col_sum_ref[0] = col_sum
    col_max_ref[0] = col_max


def infonce_loss(image_features1, image_features2, logit_scale,
                 row_tile=None, use_static_shift=None):
    """InfoNCE loss. image_features*: (B, D); logit_scale: scalar. Returns f32 scalar."""
    B, D = image_features1.shape
    assert image_features2.shape == (B, D)

    scale = jnp.asarray(logit_scale, dtype=jnp.float32).reshape(())

    # Fast single-shift path only when the scale is concrete and moderate;
    # otherwise (traced under jit, or scale > 80 where a whole row of exps could
    # underflow) use the safe per-direction-shift path.
    if use_static_shift is None:
        try:
            sv = float(jax.device_get(scale))
            use_static_shift = 0.0 < sv <= 80.0
        except Exception:
            use_static_shift = False

    # ---- one-pass normalization + scale fold (f32), hoisted out of the kernel --
    f1_32 = image_features1.astype(jnp.float32)
    f2_32 = image_features2.astype(jnp.float32)
    # F.normalize(x, dim=-1): x / max(||x||, 1e-12) == x * rsqrt(max(||x||^2, 1e-24))
    inv1 = jax.lax.rsqrt(jnp.maximum(
        jnp.sum(f1_32 * f1_32, axis=-1, keepdims=True), 1e-24))
    inv2 = jax.lax.rsqrt(jnp.maximum(
        jnp.sum(f2_32 * f2_32, axis=-1, keepdims=True), 1e-24))
    f1n_32 = f1_32 * (inv1 * scale)          # logit_scale folded into f1
    f2n_32 = f2_32 * inv2

    # Diagonal (target) logits as a row-wise dot of the f32 normalized features
    # (O(B*D), fuses with the normalization pass; more precise than extracting
    # the MXU-rounded diagonal).
    diag = jnp.sum(f1n_32 * f2n_32, axis=-1)                             # (B,)

    # bf16 MXU operands; f32 accumulation happens inside the kernel.
    f1n = f1n_32.astype(jnp.bfloat16)
    f2n = f2n_32.astype(jnp.bfloat16)

    tm = _pick_row_tile(B) if row_tile is None else row_tile
    assert B % tm == 0, "row_tile must divide the batch size"
    nblk = B // tm

    # VMEM budget from the actual footprint, capped per generation.
    est = (2 * tm * D * 2          # double-buffered bf16 f1 row tiles
           + 2 * B * D * 2         # VMEM-resident bf16 f2 (conservatively x2)
           + 3 * tm * B * 4        # f32 logits + exp + temporaries
           + 4 * (tm + 2 * B) * 4)  # small outputs, double-buffered
    try:
        vmem_cap = int(pltpu.get_tpu_info().vmem_capacity_bytes)
    except Exception:
        vmem_cap = 64 << 20        # v7x per-core worst case
    vmem_limit = int(min(max(est + (4 << 20), 32 << 20), vmem_cap * 5 // 8))

    kernel = functools.partial(_infonce_kernel, static_shift=use_static_shift)

    grid_spec = pltpu.PrefetchScalarGridSpec(
        num_scalar_prefetch=0,
        grid=(nblk,),
        in_specs=[
            pl.BlockSpec(memory_space=pltpu.SMEM),         # logit_scale (1, 1)
            pl.BlockSpec((tm, D), lambda i: (i, 0)),       # f1 row tile (streamed)
            pl.BlockSpec((B, D), lambda i: (0, 0)),        # f2: constant block -> one DMA
        ],
        out_specs=[
            pl.BlockSpec((tm, 1), lambda i: (i, 0)),       # per-row LSE
            pl.BlockSpec((1, 1, B), lambda i: (i, 0, 0)),  # per-block col sumexp (lane-dense)
            pl.BlockSpec((1, 1, B), lambda i: (i, 0, 0)),  # per-block col max    (lane-dense)
        ],
    )

    row_lse, col_sum_p, col_max_p = pl.pallas_call(
        kernel,
        out_shape=(
            jax.ShapeDtypeStruct((B, 1), jnp.float32),
            jax.ShapeDtypeStruct((nblk, 1, B), jnp.float32),
            jax.ShapeDtypeStruct((nblk, 1, B), jnp.float32),
        ),
        grid_spec=grid_spec,
        compiler_params=pltpu.CompilerParams(
            # Row blocks are fully independent (no cross-step accumulators), so
            # the single grid axis is megacore-sharded on v7x, free on v5e/v6e.
            dimension_semantics=("parallel",),
            vmem_limit_bytes=vmem_limit,
        ),
    )(scale.reshape(1, 1), f1n, f2n)

    # ---- tiny final reductions in the wrapper (XLA) ----------------------------
    row_lse = row_lse[:, 0]                                  # (B,)
    col_sum_p = col_sum_p[:, 0, :]                           # (nblk, B)
    col_max_p = col_max_p[:, 0, :]                           # (nblk, B)
    col_max = jnp.max(col_max_p, axis=0)                     # (B,)
    col_sum = jnp.sum(col_sum_p * jnp.exp(col_max_p - col_max[None, :]), axis=0)
    col_lse = col_max + jnp.log(col_sum)                     # (B,)

    # (CE(logits, arange) + CE(logits.T, arange)) / 2
    return 0.5 * (jnp.mean(row_lse) + jnp.mean(col_lse)) - jnp.mean(diag)


def _reference(f1, f2, logit_scale):
    f1 = f1 / jnp.maximum(jnp.linalg.norm(f1, axis=-1, keepdims=True), 1e-12)
    f2 = f2 / jnp.maximum(jnp.linalg.norm(f2, axis=-1, keepdims=True), 1e-12)
    logits = logit_scale * f1 @ f2.T
    n = logits.shape[0]
    idx = jnp.arange(n)

    def ce(lg):
        return jnp.mean(jax.nn.logsumexp(lg, axis=-1) - lg[idx, idx])

    return (ce(logits) + ce(logits.T)) / 2.0


if __name__ == "__main__":
    key = jax.random.PRNGKey(0)
    k1, k2, k3, k4 = jax.random.split(key, 4)
    logit_scale = jnp.exp(jnp.float32(0.07))  # deterministic temperature

    # The MXU operands are bf16 (per review; f32 accumulation), so allow a
    # slightly looser tolerance than exact-f32.
    ATOL, RTOL = 1e-2, 5e-3

    # Case 1: small, single row tile (B = 8, D = 32), fast single-shift path.
    B, D = 8, 32
    f1 = jax.random.normal(k1, (B, D), dtype=jnp.float32)
    f2 = jax.random.normal(k2, (B, D), dtype=jnp.float32)
    loss = infonce_loss(f1, f2, logit_scale)
    jax.block_until_ready(loss)
    ref = _reference(f1, f2, logit_scale)
    assert jnp.allclose(loss, ref, atol=ATOL, rtol=RTOL), (loss, ref)

    # Case 2: multi-row-block grid (2 tiles) + cross-block column merge.
    B2, D2 = 256, 64
    g1 = jax.random.normal(k3, (B2, D2), dtype=jnp.float32)
    g2 = jax.random.normal(k4, (B2, D2), dtype=jnp.float32)
    loss2 = infonce_loss(g1, g2, logit_scale, row_tile=128)
    jax.block_until_ready(loss2)
    ref2 = _reference(g1, g2, logit_scale)
    assert jnp.allclose(loss2, ref2, atol=ATOL, rtol=RTOL), (loss2, ref2)

    # Case 3: force the two-shift fallback path (used for logit_scale > 80 or
    # traced scales) on the multi-block shapes.
    loss3 = infonce_loss(g1, g2, logit_scale, row_tile=128, use_static_shift=False)
    jax.block_until_ready(loss3)
    assert jnp.allclose(loss3, ref2, atol=ATOL, rtol=RTOL), (loss3, ref2)

    print("KERNEL_OK")
</pallas_src>

<mosaic_0001>
module attributes {stable_mosaic.version = 11 : i64} {
  func.func @_infonce_kernel(%arg0: i32, %arg1: memref<1x1xf32, #tpu.memory_space<smem>>, %arg2: memref<8x32xbf16, #tpu.memory_space<vmem>>, %arg3: memref<8x32xbf16, #tpu.memory_space<vmem>>, %arg4: memref<8x1xf32, #tpu.memory_space<vmem>>, %arg5: memref<1x1x8xf32, #tpu.memory_space<vmem>>, %arg6: memref<1x1x8xf32, #tpu.memory_space<vmem>>) attributes {dimension_semantics = [#tpu.dimension_semantics<parallel>], iteration_bounds = array<i64: 1>, scalar_prefetch = 0 : i64, scratch_operands = 0 : i64, tpu.core_type = #tpu.core_type<tc>, window_params = [{transform_indices = @transform_0, window_bounds = array<i64: 1, 1>}, {transform_indices = @transform_1, window_bounds = array<i64: 8, 32>}, {pipeline_mode = #tpu.pipeline_mode<synchronous>, transform_indices = @transform_2, window_bounds = array<i64: 8, 32>}, {transform_indices = @transform_3, window_bounds = array<i64: 8, 1>}, {transform_indices = @transform_4, window_bounds = array<i64: 1, 1, 8>}, {transform_indices = @transform_5, window_bounds = array<i64: 1, 1, 8>}]} {
    %c0 = arith.constant 0 : index
    %c0_0 = arith.constant 0 : index
    %0 = vector.load %arg2[%c0, %c0_0] : memref<8x32xbf16, #tpu.memory_space<vmem>>, vector<8x32xbf16>
    %c0_1 = arith.constant 0 : index
    %c0_2 = arith.constant 0 : index
    %1 = vector.load %arg3[%c0_1, %c0_2] : memref<8x32xbf16, #tpu.memory_space<vmem>>, vector<8x32xbf16>
    %cst = arith.constant dense<0.000000e+00> : vector<8x8xf32>
    %2 = tpu.matmul %0, %1, %cst {dimension_numbers = #tpu.dot_dimension_numbers<[1], [1], [0], [0], [0, 0, 1, 0], [], []>} : vector<8x32xbf16>, vector<8x32xbf16>, vector<8x8xf32> -> vector<8x8xf32>
    %c0_3 = arith.constant 0 : index
    %c0_4 = arith.constant 0 : index
    %3 = memref.load %arg1[%c0_3, %c0_4] : memref<1x1xf32, #tpu.memory_space<smem>>
    %4 = vector.broadcast %3 : f32 to vector<8x8xf32>
    %5 = arith.subf %2, %4 : vector<8x8xf32>
    %6 = math.exp %5 : vector<8x8xf32>
    %cst_5 = arith.constant dense<0.000000e+00> : vector<8xf32>
    %7 = vector.multi_reduction <add>, %6, %cst_5 [1] : vector<8x8xf32> to vector<8xf32>
    %8 = vector.shape_cast %7 : vector<8xf32> to vector<8x1xf32>
    %9 = math.log %8 : vector<8x1xf32>
    %10 = vector.broadcast %3 : f32 to vector<8x1xf32>
    %11 = arith.addf %10, %9 : vector<8x1xf32>
    %cst_6 = arith.constant dense<0.000000e+00> : vector<8xf32>
    %12 = vector.multi_reduction <add>, %6, %cst_6 [0] : vector<8x8xf32> to vector<8xf32>
    %13 = vector.shape_cast %12 : vector<8xf32> to vector<1x8xf32>
    %14 = vector.broadcast %3 : f32 to vector<1x8xf32>
    %c0_7 = arith.constant 0 : index
    %c0_8 = arith.constant 0 : index
    %15 = vector.load %arg4[%c0_7, %c0_8] : memref<8x1xf32, #tpu.memory_space<vmem>>, vector<8x1xf32>
    tpu.vector_store %arg4[%c0_7, %c0_8], %11 {strides = array<i32>} : memref<8x1xf32, #tpu.memory_space<vmem>>, vector<8x1xf32>,
    %c0_9 = arith.constant 0 : index
    %c0_10 = arith.constant 0 : index
    %c0_11 = arith.constant 0 : index
    %16 = vector.load %arg5[%c0_9, %c0_10, %c0_11] : memref<1x1x8xf32, #tpu.memory_space<vmem>>, vector<1x1x8xf32>
    %17 = vector.shape_cast %16 : vector<1x1x8xf32> to vector<1x8xf32>
    %18 = vector.shape_cast %13 : vector<1x8xf32> to vector<1x1x8xf32>
    tpu.vector_store %arg5[%c0_9, %c0_10, %c0_11], %18 {strides = array<i32>} : memref<1x1x8xf32, #tpu.memory_space<vmem>>, vector<1x1x8xf32>,
    %c0_12 = arith.constant 0 : index
    %c0_13 = arith.constant 0 : index
    %c0_14 = arith.constant 0 : index
    %19 = vector.load %arg6[%c0_12, %c0_13, %c0_14] : memref<1x1x8xf32, #tpu.memory_space<vmem>>, vector<1x1x8xf32>
    %20 = vector.shape_cast %19 : vector<1x1x8xf32> to vector<1x8xf32>
    %21 = vector.shape_cast %14 : vector<1x8xf32> to vector<1x1x8xf32>
    tpu.vector_store %arg6[%c0_12, %c0_13, %c0_14], %21 {strides = array<i32>} : memref<1x1x8xf32, #tpu.memory_space<vmem>>, vector<1x1x8xf32>,
    return
  }
  func.func @transform_0(%arg0: i32) -> (i32, i32) {
    %c0_i32 = arith.constant 0 : i32
    %c0_i32_0 = arith.constant 0 : i32
    %c0_i32_1 = arith.constant 0 : i32
    return %c0_i32, %c0_i32_0 : i32, i32
  }
  func.func @transform_1(%arg0: i32) -> (i32, i32) {
    %c0_i32 = arith.constant 0 : i32
    %c0_i32_0 = arith.constant 0 : i32
    return %arg0, %c0_i32 : i32, i32
  }
  func.func @transform_2(%arg0: i32) -> (i32, i32) {
    %c0_i32 = arith.constant 0 : i32
    %c0_i32_0 = arith.constant 0 : i32
    %c0_i32_1 = arith.constant 0 : i32
    return %c0_i32, %c0_i32_0 : i32, i32
  }
  func.func @transform_3(%arg0: i32) -> (i32, i32) {
    %c0_i32 = arith.constant 0 : i32
    %c0_i32_0 = arith.constant 0 : i32
    return %arg0, %c0_i32 : i32, i32
  }
  func.func @transform_4(%arg0: i32) -> (i32, i32, i32) {
    %c0_i32 = arith.constant 0 : i32
    %c0_i32_0 = arith.constant 0 : i32
    %c0_i32_1 = arith.constant 0 : i32
    return %arg0, %c0_i32, %c0_i32_0 : i32, i32, i32
  }
  func.func @transform_5(%arg0: i32) -> (i32, i32, i32) {
    %c0_i32 = arith.constant 0 : i32
    %c0_i32_0 = arith.constant 0 : i32
    %c0_i32_1 = arith.constant 0 : i32
    return %arg0, %c0_i32, %c0_i32_0 : i32, i32, i32
  }
}

</mosaic_0001>

<bundles_post_ra>
// kernel: tpu_custom_call.1
= control target key start
LH: loop header
LB: loop body
LE: loop exit
PB: predicated region body
PF: predicated region fallthrough
CT: control target
= control target key end

     0   :  { %12 = vsyncpa [#allocation4], 0  ;;  %s299_s0 = inlined_call_operand.<no memory space> [shape: f32[1,1], index: 0, kind: input, shape index: {}]   ;;  %s300_s1 = inlined_call_operand.hbm [shape: bf16[8,32], index: 1, kind: input, shape index: {}]   ;;  %s301_s2 = inlined_call_operand.hbm [shape: bf16[8,32], index: 2, kind: input, shape index: {}]   ;;  %s302_s3 = inlined_call_operand.vmem [shape: f32[8,1], index: 3, kind: output, shape index: {0}]   ;;  %s303_s4 = inlined_call_operand.hbm [shape: f32[1,1,8], index: 4, kind: output, shape index: {1}]   ;;  %s304_s5 = inlined_call_operand.hbm [shape: f32[1,1,8], index: 5, kind: output, shape index: {2}]  }
   0x1   :  { %13 = vsyncpa [#allocation7], 0 }
   0x2   :  { %14 = vsyncpa [#allocation5], 0 }
   0x3   :  { %15 = vsyncpa [#allocation10], 0  ;;  %s23_s20 = sshll.u32 %s300_s1, 4  ;;  %s245_s21 = smov [#allocation3]   ;;  %s24_s20 = int_to_ptr.hbm [resolvable:$true] %s23_s20 }
   0x4   :  { %s25_s22 = sshll.u32 %s245_s21, 4  ;;  %s34_s25 = sshll.u32 %s301_s2, 4  ;;  %s26_s22 = int_to_ptr.vmem [resolvable:$true] %s25_s22  ;;  %s35_s25 = int_to_ptr.hbm [resolvable:$true] %s34_s25 }
   0x5   :  { %28 = dma.hbm_to_vmem [thread:$0]  %s24_s20, 64, %s26_s22, [#allocation4]  }
   0x6   :  { %s246_s26 = smov [#allocation6]  }
   0x7   :  { %s36_s27 = sshll.u32 %s246_s26, 4  ;;  %s37_s27 = int_to_ptr.vmem [resolvable:$true] %s36_s27 }
   0x8   :  { %39 = dma.hbm_to_vmem [thread:$0]  %s35_s25, 64, %s37_s27, [#allocation7]  }
   0x9   :  { %237 = dma.done.wait [#allocation4], 64  }
   0xa   :  { %238 = vsyncadd [#allocation4], 4294967232 }
   0xb   :  { %239 = dma.done.wait [#allocation7], 64  }
   0xc   :  { %240 = vsyncadd [#allocation7], 4294967232  ;;  %vm51_vm0 = vcmask 261120   ;;  %v50_v0 = vld [vmem:[#allocation6] sm:$0xf]  ;;  %v72_v3 = vstv %s299_s0  ;;  %vm91_vm1 = vcmask 57344  }
   0xd   :  { %v56_v1 = vsel %vm51_vm0, %v50_v0, 0  ;;  %v49_v2 = vld [vmem:[#allocation3] sm:$0xf]  ;;  %93 = vst.msk [vmem:[#allocation9] sm:$0x1] %vm91_vm1, %v72_v3  ;;  %vm76_vm2 = vcmask 64512  }
   0xe   :  { %65 = vmatpush.bf16.xpose.msra.mxu0 %v56_v1  ;;  %s247_s2 = smov [#allocation9]   ;;  %s114_s7 = sshll.u32 %s304_s5, 4  ;;  %vm89_vm3 = vcmask 7168   ;;  %s115_s7 = int_to_ptr.hbm [resolvable:$true] %s114_s7 }
   0xf   :  { %s112_s29 = sshll.u32 %s247_s2, 4  ;;  %s248_s0 = smov [#allocation8]   ;;  %s113_s29 = int_to_ptr.vmem [resolvable:$true] %s112_s29 }
  0x10   :  { %117 = dma.vmem_to_hbm [thread:$0]  %s113_s29, 16, %s115_s7, [#allocation10]  }
  0x11   :  { %s101_s8 = sshll.u32 %s248_s0, 4  ;;  %s103_s11 = sshll.u32 %s303_s4, 4  ;;  %s102_s8 = int_to_ptr.vmem [resolvable:$true] %s101_s8  ;;  %s104_s11 = int_to_ptr.hbm [resolvable:$true] %s103_s11 }
  0x15   :  { %132 = vmatmul.msk.bf16.vlgmr.msra.gmra.mxu0 %vm51_vm0, %v49_v2 }
  0x92   :  { %v67_v4 = vpop.f32.mrf.mxu0 }
  0x93   :  { %v73_v5 = vsub.f32 %v67_v4, %v72_v3 }
  0x95   :  { %v74_v6 = vmul.f32 1.442695, %v73_v5 }
  0x97   :  { %137 = vpow2.f32 %v74_v6 }
  0x9a   :  { %v69_v7 = vpop.f32.mrf.mxu0 }
  0x9d   :  { %v138_v8 = vpop.eup %137 }
  0x9e   :  { %v77_v9 = vsel %vm76_vm2, %v138_v8, 0.0 }
  0x9f   :  { %78 = vadd.xlane.f32.xlu0 %v77_v9  ;;  %v83_v10 = vrot.slane %v77_v9, 4 }
  0xa1   :  { %v84_v11 = vadd.f32 %v83_v10, %v77_v9 }
  0xa3   :  { %v85_v12 = vrot.slane %v84_v11, 2 }
  0xa5   :  { %v86_v13 = vadd.f32 %v85_v12, %v84_v11 }
  0xa7   :  { %v87_v14 = vrot.slane %v86_v13, 1 }
  0xa9   :  { %v88_v15 = vadd.f32 %v87_v14, %v86_v13 }
  0xab   :  { %92 = vst.msk [vmem:[#allocation8] sm:$0x1] %vm91_vm1, %v88_v15 }
  0xac   :  { %106 = dma.vmem_to_hbm [thread:$0]  %s102_s8, 16, %s104_s11, [#allocation5]  }
 0x112   :  { %v79_v16 = vpop.xlane.xlu0 %78 }
 0x113   :  { %139 = vlog2.f32 %v79_v16 }
 0x119   :  { %v140_v17 = vpop.eup %139 }
 0x11a   :  { %v81_v18 = vmul.f32 0.6931472, %v140_v17 }
 0x11c   :  { %v82_v19 = vadd.f32 %v81_v18, %v72_v3 }
 0x11e   :  { %90 = vst.msk [vmem:[%s302_s3] sm:$0xff] %vm89_vm3, %v82_v19 }
 0x11f   :  { %241 = dma.done.wait [#allocation5], 16  }
 0x120   :  { %242 = vsyncadd [#allocation5], 4294967280 }
 0x121   :  { %243 = dma.done.wait [#allocation10], 16  }
 0x122   :  { %244 = vsyncadd [#allocation10], 4294967280 }
 0x123   :  { %128 = vsyncpa [#allocation4], 1 }
 0x124   :  { %129 = vsyncpa [#allocation7], 1 }
 0x125   :  { %130 = vsyncpa [#allocation5], 1 }
 0x126   :  { %131 = vsyncpa [#allocation10], 1 }

</bundles_post_ra>
